<compile_context>
chip_gen: v7x
topology: tpu7x:2x2x1
jax: 0.10.0
libtpu: 0.0.40
codegen_flags: <defaults>
</compile_context>

<pallas_src>
import functools
import math

import jax
import jax.numpy as jnp
from jax import lax
from jax.experimental import pallas as pl
from jax.experimental.pallas import tpu as pltpu


def _round_up(x, m):
    return ((x + m - 1) // m) * m


def _rope_kernel(pos_ref, xe_ref, xo_ref, oe_ref, oo_ref, *, d_model, theta):
    """Apply rotary embedding to one (rows_tile, d_model/2) tile.

    pos_ref : (T, 1)  f32 positions for each row
    xe_ref  : (T, H)  f32 even-index ("real") halves of the feature pairs
    xo_ref  : (T, H)  f32 odd-index  ("imag") halves of the feature pairs
    oe_ref/oo_ref : same shapes, rotated outputs
    """
    half = d_model // 2

    # inv_freq_j = theta^(-2j/d) rebuilt in-kernel (iota + EUP exp) — no table
    # gather, no per-row cos/sin DMA from HBM.
    j = lax.broadcasted_iota(jnp.int32, (1, half), 1).astype(jnp.float32)
    inv_freq = jnp.exp(j * (-2.0 * math.log(theta) / d_model))     # (1, H)

    pos = pos_ref[...]                                             # (T, 1)
    ang = pos * inv_freq                                           # (T, H)
    c = jnp.cos(ang)                                               # EUP
    s = jnp.sin(ang)                                               # EUP

    xe = xe_ref[...].astype(jnp.float32)
    xo = xo_ref[...].astype(jnp.float32)

    # (xe + i*xo) * (c + i*s)
    oe_ref[...] = (xe * c - xo * s).astype(oe_ref.dtype)
    oo_ref[...] = (xe * s + xo * c).astype(oo_ref.dtype)


def rotary_positional_encoding(xq_indexes, xk_indexes, xq, xk,
                               *, theta=10000.0, row_tile=512):
    """Pallas forward matching RotaryPositionalEncoding.forward.

    xq: [B, Sq, D], xk: [B, Sk, D]; indexes: [B, S] or [S] integer positions.
    Returns (xq_out, xk_out) with the same shapes/dtypes as the inputs.
    Note: the PyTorch module precomputes a freqs_cis table up to max_seq_len;
    here cos/sin are computed in-kernel directly from the position values, so
    no table (and no max_seq_len bound) is needed.
    """
    B, Sq, D = xq.shape
    Bk, Sk, Dk = xk.shape
    assert D == Dk and D % 2 == 0
    half = D // 2
    out_dtype = xq.dtype

    def prep(x, idx):
        b, s, _ = x.shape
        idx = jnp.broadcast_to(jnp.asarray(idx), (b, s))
        pos = idx.astype(jnp.float32).reshape(b * s, 1)
        # Wrapper-side layout plumbing: split adjacent (even, odd) feature
        # pairs so the kernel works on two dense (rows, D/2) slabs.
        xp = x.reshape(b * s, half, 2)
        return pos, xp[..., 0], xp[..., 1]

    pq, qe, qo = prep(xq, xq_indexes)
    pk, ke, ko = prep(xk, xk_indexes)
    rows_q, rows_k = pq.shape[0], pk.shape[0]
    rows = rows_q + rows_k

    # One kernel launch for q and k together (same d_model).
    pos = jnp.concatenate([pq, pk], axis=0)
    xe = jnp.concatenate([qe, ke], axis=0).astype(out_dtype)
    xo = jnp.concatenate([qo, ko], axis=0).astype(out_dtype)

    # Row tiling: multiples of 8 (sublane), capped so per-step VMEM stays small
    # but grid steps are large enough to hide the ~0.35us per-step overhead.
    tr = min(row_tile, _round_up(rows, 8))
    rows_p = _round_up(rows, tr)
    if rows_p != rows:
        pad = ((0, rows_p - rows), (0, 0))
        pos = jnp.pad(pos, pad)   # padded rows get pos=0 -> cos=1, sin=0 (no NaNs)
        xe = jnp.pad(xe, pad)
        xo = jnp.pad(xo, pad)

    kernel = functools.partial(_rope_kernel, d_model=D, theta=float(theta))

    def row_spec(width):
        return pl.BlockSpec((tr, width), lambda i: (i, 0))

    oe, oo = pl.pallas_call(
        kernel,
        out_shape=(jax.ShapeDtypeStruct((rows_p, half), out_dtype),
                   jax.ShapeDtypeStruct((rows_p, half), out_dtype)),
        grid=(rows_p // tr,),
        in_specs=[row_spec(1), row_spec(half), row_spec(half)],
        out_specs=(row_spec(half), row_spec(half)),
        compiler_params=pltpu.CompilerParams(
            dimension_semantics=("parallel",),
            vmem_limit_bytes=48 * 1024 * 1024,  # fits v5e/v6e/v7x scoped VMEM
        ),
    )(pos, xe, xo)

    # Re-interleave pairs and split back into q / k.
    out = jnp.stack([oe[:rows], oo[:rows]], axis=-1)      # (rows, half, 2)
    out_q = out[:rows_q].reshape(B, Sq, D).astype(xq.dtype)
    out_k = out[rows_q:].reshape(Bk, Sk, D).astype(xk.dtype)
    return out_q, out_k


def _reference(xq_indexes, xk_indexes, xq, xk, *, max_seq_len=5000, theta=10000.0):
    """Pure-JAX reference mirroring the PyTorch module (complex math in real form)."""
    d = xq.shape[-1]
    freqs = 1.0 / (theta ** (jnp.arange(0, d, 2)[: d // 2].astype(jnp.float32) / d))
    t = jnp.arange(max_seq_len, dtype=jnp.float32)
    ang = jnp.outer(t, freqs)                    # (max_seq_len, d/2)
    cos_t, sin_t = jnp.cos(ang), jnp.sin(ang)

    def apply(x, idx):
        idx = jnp.asarray(idx).astype(jnp.int32)
        c = cos_t[idx]
        s = sin_t[idx]
        xr = x.reshape(*x.shape[:-1], -1, 2)
        re, im = xr[..., 0], xr[..., 1]
        out_re = re * c - im * s
        out_im = re * s + im * c
        return jnp.stack([out_re, out_im], axis=-1).reshape(x.shape).astype(x.dtype)

    return apply(xq, xq_indexes), apply(xk, xk_indexes)


if __name__ == "__main__":
    B, Sq, Sk, D = 2, 8, 8, 32
    MAX_SEQ = 64

    root = jax.random.PRNGKey(0)
    k1, k2, k3, k4 = jax.random.split(root, 4)

    xq = jax.random.normal(k1, (B, Sq, D), jnp.float32)
    xk = jax.random.normal(k2, (B, Sk, D), jnp.float32)
    xq_idx = jax.random.randint(k3, (B, Sq), 0, MAX_SEQ, dtype=jnp.int32)
    xk_idx = jax.random.randint(k4, (B, Sk), 0, MAX_SEQ, dtype=jnp.int32)

    oq, ok = rotary_positional_encoding(xq_idx, xk_idx, xq, xk)
    jax.block_until_ready((oq, ok))

    rq, rk = _reference(xq_idx, xk_idx, xq, xk, max_seq_len=MAX_SEQ)

    assert oq.shape == xq.shape and ok.shape == xk.shape
    assert oq.dtype == xq.dtype and ok.dtype == xk.dtype
    assert jnp.allclose(oq, rq, rtol=1e-4, atol=1e-4), float(jnp.max(jnp.abs(oq - rq)))
    assert jnp.allclose(ok, rk, rtol=1e-4, atol=1e-4), float(jnp.max(jnp.abs(ok - rk)))

    print("KERNEL_OK")
</pallas_src>

<mosaic_0001>
module attributes {stable_mosaic.version = 11 : i64} {
  func.func @_rope_kernel(%arg0: i32, %arg1: memref<32x1xf32, #tpu.memory_space<vmem>>, %arg2: memref<32x16xf32, #tpu.memory_space<vmem>>, %arg3: memref<32x16xf32, #tpu.memory_space<vmem>>, %arg4: memref<32x16xf32, #tpu.memory_space<vmem>>, %arg5: memref<32x16xf32, #tpu.memory_space<vmem>>) attributes {dimension_semantics = [#tpu.dimension_semantics<parallel>], iteration_bounds = array<i64: 1>, scalar_prefetch = 0 : i64, scratch_operands = 0 : i64, tpu.core_type = #tpu.core_type<tc>, window_params = [{transform_indices = @transform_0, window_bounds = array<i64: 32, 1>}, {transform_indices = @transform_1, window_bounds = array<i64: 32, 16>}, {transform_indices = @transform_2, window_bounds = array<i64: 32, 16>}, {transform_indices = @transform_3, window_bounds = array<i64: 32, 16>}, {transform_indices = @transform_4, window_bounds = array<i64: 32, 16>}]} {
    %0 = tpu.iota {dimensions = array<i32: 1>} : vector<1x16xi32>
    %1 = arith.sitofp %0 : vector<1x16xi32> to vector<1x16xf32>
    %cst = arith.constant -0.575646281 : f32
    %2 = vector.broadcast %cst : f32 to vector<1x16xf32>
    %3 = arith.mulf %1, %2 : vector<1x16xf32>
    %4 = math.exp %3 : vector<1x16xf32>
    %c0 = arith.constant 0 : index
    %c0_0 = arith.constant 0 : index
    %5 = vector.load %arg1[%c0, %c0_0] : memref<32x1xf32, #tpu.memory_space<vmem>>, vector<32x1xf32>
    %6 = vector.broadcast %5 : vector<32x1xf32> to vector<32x16xf32>
    %7 = vector.broadcast %4 : vector<1x16xf32> to vector<32x16xf32>
    %8 = arith.mulf %6, %7 : vector<32x16xf32>
    %9 = math.cos %8 : vector<32x16xf32>
    %10 = math.sin %8 : vector<32x16xf32>
    %c0_1 = arith.constant 0 : index
    %c0_2 = arith.constant 0 : index
    %11 = vector.load %arg2[%c0_1, %c0_2] : memref<32x16xf32, #tpu.memory_space<vmem>>, vector<32x16xf32>
    %c0_3 = arith.constant 0 : index
    %c0_4 = arith.constant 0 : index
    %12 = vector.load %arg3[%c0_3, %c0_4] : memref<32x16xf32, #tpu.memory_space<vmem>>, vector<32x16xf32>
    %13 = arith.mulf %11, %9 : vector<32x16xf32>
    %14 = arith.mulf %12, %10 : vector<32x16xf32>
    %15 = arith.subf %13, %14 : vector<32x16xf32>
    %c0_5 = arith.constant 0 : index
    %c0_6 = arith.constant 0 : index
    %16 = vector.load %arg4[%c0_5, %c0_6] : memref<32x16xf32, #tpu.memory_space<vmem>>, vector<32x16xf32>
    tpu.vector_store %arg4[%c0_5, %c0_6], %15 {strides = array<i32>} : memref<32x16xf32, #tpu.memory_space<vmem>>, vector<32x16xf32>,
    %17 = arith.mulf %11, %10 : vector<32x16xf32>
    %18 = arith.mulf %12, %9 : vector<32x16xf32>
    %19 = arith.addf %17, %18 : vector<32x16xf32>
    %c0_7 = arith.constant 0 : index
    %c0_8 = arith.constant 0 : index
    %20 = vector.load %arg5[%c0_7, %c0_8] : memref<32x16xf32, #tpu.memory_space<vmem>>, vector<32x16xf32>
    tpu.vector_store %arg5[%c0_7, %c0_8], %19 {strides = array<i32>} : memref<32x16xf32, #tpu.memory_space<vmem>>, vector<32x16xf32>,
    return
  }
  func.func @transform_0(%arg0: i32) -> (i32, i32) {
    %c0_i32 = arith.constant 0 : i32
    %c0_i32_0 = arith.constant 0 : i32
    return %arg0, %c0_i32 : i32, i32
  }
  func.func @transform_1(%arg0: i32) -> (i32, i32) {
    %c0_i32 = arith.constant 0 : i32
    %c0_i32_0 = arith.constant 0 : i32
    return %arg0, %c0_i32 : i32, i32
  }
  func.func @transform_2(%arg0: i32) -> (i32, i32) {
    %c0_i32 = arith.constant 0 : i32
    %c0_i32_0 = arith.constant 0 : i32
    return %arg0, %c0_i32 : i32, i32
  }
  func.func @transform_3(%arg0: i32) -> (i32, i32) {
    %c0_i32 = arith.constant 0 : i32
    %c0_i32_0 = arith.constant 0 : i32
    return %arg0, %c0_i32 : i32, i32
  }
  func.func @transform_4(%arg0: i32) -> (i32, i32) {
    %c0_i32 = arith.constant 0 : i32
    %c0_i32_0 = arith.constant 0 : i32
    return %arg0, %c0_i32 : i32, i32
  }
}

</mosaic_0001>

<bundles_post_ra>
// kernel: tpu_custom_call.1
= control target key start
LH: loop header
LB: loop body
LE: loop exit
PB: predicated region body
PF: predicated region fallthrough
CT: control target
= control target key end

     0   :  { %v1002_v0 = vmov 0   ;;  %v16_v5 = vlaneseq  ;;  %v1003_v43 = vmov 683565275   ;;  %v1004_v47 = vmov 2475754826   ;;  %s1434_s0 = inlined_call_operand.vmem [shape: f32[32,1], index: 0, kind: input, shape index: {}]   ;;  %s1435_s1 = inlined_call_operand.vmem [shape: f32[32,16], index: 1, kind: input, shape index: {}]   ;;  %s1436_s2 = inlined_call_operand.vmem [shape: f32[32,16], index: 2, kind: input, shape index: {}]   ;;  %s1437_s3 = inlined_call_operand.vmem [shape: f32[32,16], index: 3, kind: output, shape index: {0}]   ;;  %s1438_s4 = inlined_call_operand.vmem [shape: f32[32,16], index: 4, kind: output, shape index: {1}]  }
   0x1   :  { %983 = vset.pattern.permute.xlu1 %v1002_v0  ;;  %982 = vset.pattern.permute.xlu0 %v1002_v0  ;;  %v24_v1 = vld [vmem:[%s1434_s0 + $0x10] sm:$0xff]  ;;  %v22_v2 = vld [vmem:[%s1434_s0] sm:$0xff]  ;;  %v25_v3 = vld [vmem:[%s1434_s0 + $0x18] sm:$0xff]  ;;  %v1005_v49 = vmov 2131351028  }
   0x2   :  { %38 = vperm.xlu1 %983, %v24_v1   ;;  %28 = vperm.xlu0 %982, %v22_v2   ;;  %v23_v4 = vld [vmem:[%s1434_s0 + $0x8] sm:$0xff]  ;;  %v17_v6 = vand.u32 127, %v16_v5  ;;  %v1006_v51 = vmov 2102212464   ;;  %v1007_v53 = vmov 920167782  }
   0x3   :  { %v1008_v60 = vmov 1326507024  }
   0x4   :  { %v18_v7 = vcvt.s32.f32 %v17_v6 }
   0x6   :  { %43 = vperm.xlu1 %983, %v25_v3   ;;  %33 = vperm.xlu0 %982, %v23_v4   ;;  %v19_v8 = vmul.f32 -0.5756463, %v18_v7 }
   0x8   :  { %v20_v9 = vmul.f32 1.442695, %v19_v8 }
   0xa   :  { %984 = vpow2.f32 %v20_v9 }
  0x14   :  { %v1046_v10 = vpop.eup %984 }
  0x81   :  { %v39_v11 = vpop.permute.xlu1 %38  ;;  %v29_v12 = vpop.permute.xlu0 %28 }
  0x82   :  { %v1049_v13 = vmul.f32 %v1046_v10, %v39_v11  ;;  %v1052_v14 = vmul.f32 %v1046_v10, %v29_v12 }
  0x84   :  { %v256_v15 = vand.u32 2147483647, %v1049_v13  ;;  %v259_v16 = vand.u32 2139095040, %v1049_v13  ;;  %v50_v17 = vand.u32 2147483647, %v1052_v14  ;;  %v53_v18 = vand.u32 2139095040, %v1052_v14 }
  0x85   :  { %v44_v19 = vpop.permute.xlu1 %43  ;;  %vm258_vm13 = vcmp.lt.s32.totalorder %v1049_v13, 0 }
  0x86   :  { %v260_v20 = vshrl.u32 %v259_v16, 23  ;;  %v1059_v21 = vmul.f32 %v1046_v10, %v44_v19  ;;  %v263_v22 = vand.u32 8388607, %v256_v15  ;;  %v54_v23 = vshrl.u32 %v53_v18, 23 }
  0x87   :  { %v57_v24 = vand.u32 8388607, %v50_v17  ;;  %vm1150_vm14 = vcmp.le.f32.partialorder %v256_v15, 0.7853982 }
  0x88   :  { %v935_v25 = vadd.s32 4294967169, %v260_v20  ;;  %v927_v26 = vadd.s32 4294967169, %v54_v23  ;;  %v362_v27 = vand.u32 2139095040, %v1059_v21  ;;  %v264_v29 = vor.u32 8388608, %v263_v22 }
  0x89   :  { %v58_v30 = vor.u32 8388608, %v57_v24  ;;  %v359_v41 = vand.u32 2147483647, %v1059_v21 }
  0x8a   :  { %v266_v28 = vadd.s32 1, %v935_v25  ;;  %v60_v31 = vadd.s32 1, %v927_v26  ;;  %v363_v32 = vshrl.u32 %v362_v27, 23  ;;  %v1066_v38 = vshll.u32 %v264_v29, 8 }
  0x8b   :  { %v1070_v40 = vshll.u32 %v58_v30, 8 }
  0x8c   :  { %vm267_vm0 = vcmp.gt.s32.totalorder %v266_v28, 0  ;;  %vm61_vm1 = vcmp.gt.s32.totalorder %v60_v31, 0  ;;  %v939_v34 = vadd.s32 4294967169, %v363_v32 }
  0x8d   :  { %v268_v33 = vsel %vm267_vm0, %v266_v28, 0  ;;  %v62_v37 = vsel %vm61_vm1, %v60_v31, 0  ;;  %vm52_vm0 = vcmp.lt.s32.totalorder %v1052_v14, 0 }
  0x8e   :  { %v269_v35 = vshrl.u32 %v268_v33, 5  ;;  %v270_v36 = vand.u32 31, %v268_v33  ;;  %v1068_v39 = vshrl.u32 %v62_v37, 5  ;;  %v64_v45 = vand.u32 31, %v62_v37 }
  0x8f   :  { %v1074_v46 = vadd.s32 1, %v939_v34 }
  0x90   :  { %v271_v42 = vsub.s32 32, %v270_v36  ;;  %v273_v44 = vshll.u32 %v1003_v43, %v270_v36  ;;  %v276_v48 = vshll.u32 %v1004_v47, %v270_v36  ;;  %v279_v50 = vshll.u32 %v1005_v49, %v270_v36 }
  0x91   :  { %v282_v52 = vshll.u32 %v1006_v51, %v270_v36  ;;  %v285_v54 = vshll.u32 %v1007_v53, %v270_v36  ;;  %vm288_vm2 = vcmp.lt.s32.totalorder %v269_v35, 1  ;;  %vm289_vm3 = vcmp.lt.s32.totalorder %v269_v35, 2 }
  0x92   :  { %v274_v55 = vshrl.u32 %v1004_v47, %v271_v42  ;;  %v277_v56 = vshrl.u32 %v1005_v49, %v271_v42  ;;  %v280_v57 = vshrl.u32 %v1006_v51, %v271_v42  ;;  %v272_v58 = vshrl.u32 %v1003_v43, %v271_v42 }
  0x93   :  { %v283_v59 = vshrl.u32 %v1007_v53, %v271_v42  ;;  %v286_v61 = vshrl.u32 %v1008_v60, %v271_v42  ;;  %v65_v1 = vsub.s32 32, %v64_v45  ;;  %vm290_vm4 = vcmp.lt.s32.totalorder %v269_v35, 3 }
  0x94   :  { %v275_v62 = vor.u32 %v274_v55, %v273_v44  ;;  %v278_v63 = vor.u32 %v277_v56, %v276_v48  ;;  %v281_v0 = vor.u32 %v280_v57, %v279_v50  ;;  %vm291_vm5 = vcmp.lt.s32.totalorder %v269_v35, 4 }
  0x95   :  { %v284_v2 = vor.u32 %v283_v59, %v282_v52  ;;  %v287_v3 = vor.u32 %v286_v61, %v285_v54  ;;  %v67_v12 = vshll.u32 %v1003_v43, %v64_v45  ;;  %v68_v19 = vshrl.u32 %v1004_v47, %v65_v1 }
  0x96   :  { %v292_v4 = vsel %vm288_vm2, %v272_v58, %v275_v62  ;;  %v293_v5 = vsel %vm291_vm5, %v281_v0, 2102212464  ;;  %v296_v6 = vsel %vm288_vm2, %v275_v62, %v278_v63  ;;  %v300_v7 = vsel %vm288_vm2, %v278_v63, %v281_v0 }
  0x97   :  { %v294_v8 = vsel %vm290_vm4, %v278_v63, %v293_v5  ;;  %v297_v9 = vsel %vm291_vm5, %v284_v2, 920167782  ;;  %v301_v11 = vsel %vm291_vm5, %v287_v3, 1326507024  ;;  %v70_v20 = vshll.u32 %v1004_v47, %v64_v45  ;;  %v34_v63 = vpop.permute.xlu0 %33 }
  0x98   :  { %v298_v16 = vsel %vm290_vm4, %v281_v0, %v297_v9  ;;  %v302_v18 = vsel %vm290_vm4, %v284_v2, %v301_v11  ;;  %v295_v22 = vsel %vm289_vm3, %v292_v4, %v294_v8  ;;  %v71_v25 = vshrl.u32 %v1005_v49, %v65_v1 }
  0x99   :  { %v299_v23 = vsel %vm289_vm3, %v296_v6, %v298_v16  ;;  %v303_v24 = vsel %vm289_vm3, %v300_v7, %v302_v18  ;;  %v69_v30 = vor.u32 %v68_v19, %v67_v12  ;;  %v73_v32 = vshll.u32 %v1005_v49, %v64_v45 }
  0x9a   :  { %v1097_v26 = vmul.u32.u64.low %v1066_v38, %v303_v24  ;;  %v1098_v27 = vmul.u32.u64.high %v1066_v38, %v303_v24, %v1097_v26  ;;  %v1101_v28 = vmul.u32.u64.low %v1066_v38, %v299_v23  ;;  %v1102_v29 = vmul.u32.u64.high %v1066_v38, %v299_v23, %v1101_v28 }
  0x9b   :  { %v72_v31 = vor.u32 %v71_v25, %v70_v20  ;;  %v74_v33 = vshrl.u32 %v1006_v51, %v65_v1  ;;  %v66_v34 = vshrl.u32 %v1003_v43, %v65_v1  ;;  %v76_v35 = vshll.u32 %v1006_v51, %v64_v45 }
  0x9c   :  { %v77_v36 = vshrl.u32 %v1007_v53, %v65_v1  ;;  %v80_v37 = vshrl.u32 %v1008_v60, %v65_v1  ;;  %v311_v42 = vmul.u32 %v1066_v38, %v295_v22  ;;  %v79_v48 = vshll.u32 %v1007_v53, %v64_v45 }
  0x9d   :  { %v75_v44 = vor.u32 %v74_v33, %v73_v32  ;;  %vm82_vm6 = vcmp.lt.s32.totalorder %v1068_v39, 1  ;;  %vm313_vm7 = vc.u32 %v1098_v27, %v1101_v28  ;;  %v314_v50 = vadd.s32 1, %v1102_v29 }
  0x9e   :  { %v78_v52 = vor.u32 %v77_v36, %v76_v35  ;;  %vm83_vm8 = vcmp.lt.s32.totalorder %v1068_v39, 2  ;;  %v81_v54 = vor.u32 %v80_v37, %v79_v48  ;;  %vm84_vm9 = vcmp.lt.s32.totalorder %v1068_v39, 3 }
  0x9f   :  { %vm85_vm10 = vcmp.lt.s32.totalorder %v1068_v39, 4  ;;  %v90_v55 = vsel %vm82_vm6, %v69_v30, %v72_v31  ;;  %v315_v38 = vsel %vm313_vm7, %v314_v50, %v1102_v29  ;;  %v94_v57 = vsel %vm82_vm6, %v72_v31, %v75_v44 }
  0xa0   :  { %v87_v56 = vsel %vm85_vm10, %v75_v44, 2102212464  ;;  %v91_v45 = vsel %vm85_vm10, %v78_v52, 920167782  ;;  %v316_v58 = vadd.s32 %v315_v38, %v311_v42  ;;  %v86_v59 = vsel %vm82_vm6, %v66_v34, %v69_v30 }
  0xa1   :  { %v92_v61 = vsel %vm84_vm9, %v75_v44, %v91_v45  ;;  %v95_v62 = vsel %vm85_vm10, %v81_v54, 1326507024  ;;  %v88_v0 = vsel %vm84_vm9, %v72_v31, %v87_v56  ;;  %vm370_vm11 = vcmp.gt.s32.totalorder %v1074_v46, 0 }
  0xa2   :  { %v93_v1 = vsel %vm83_vm8, %v90_v55, %v92_v61  ;;  %v96_v2 = vsel %vm84_vm9, %v78_v52, %v95_v62  ;;  %v317_v3 = vadd.s32 536870912, %v316_v58  ;;  %v1135_v9 = vmul.f32 %v1046_v10, %v34_v63 }
  0xa3   :  { %v97_v4 = vsel %vm83_vm8, %v94_v57, %v96_v2  ;;  %v1127_v5 = vmul.u32.u64.low %v1070_v40, %v93_v1  ;;  %v1128_v6 = vmul.u32.u64.high %v1070_v40, %v93_v1, %v1127_v5  ;;  %v89_v12 = vsel %vm83_vm8, %v86_v59, %v88_v0 }
  0xa4   :  { %v1131_v7 = vmul.u32.u64.low %v1070_v40, %v97_v4  ;;  %v1132_v8 = vmul.u32.u64.high %v1070_v40, %v97_v4, %v1131_v7  ;;  %v318_v11 = vshrl.u32 %v317_v3, 30  ;;  %v371_v16 = vsel %vm370_vm11, %v1074_v46, 0 }
  0xa5   :  { %v108_v19 = vadd.s32 1, %v1128_v6  ;;  %v366_v20 = vand.u32 8388607, %v359_v41  ;;  %v105_v22 = vmul.u32 %v1070_v40, %v89_v12  ;;  %v156_v23 = vand.u32 2139095040, %v1135_v9 }
  0xa6   :  { %v319_v18 = vshll.u32 %v318_v11, 30  ;;  %vm107_vm12 = vc.u32 %v1132_v8, %v1127_v5  ;;  %v373_v25 = vand.u32 31, %v371_v16  ;;  %v342_v39 = vsub.s32 4, %v318_v11 }
  0xa7   :  { %v109_v24 = vsel %vm107_vm12, %v108_v19, %v1128_v6  ;;  %v367_v46 = vor.u32 8388608, %v366_v20  ;;  %v157_v31 = vshrl.u32 %v156_v23, 23  ;;  %v153_v36 = vand.u32 2147483647, %v1135_v9 }
  0xa8   :  { %v320_v10 = vsub.s32 %v316_v58, %v319_v18  ;;  %v110_v26 = vadd.s32 %v109_v24, %v105_v22  ;;  %v374_v33 = vsub.s32 32, %v373_v25  ;;  %v343_v34 = vsel %vm258_vm13, %v342_v39, %v318_v11 }
  0xa9   :  { %v312_v37 = vadd.s32 %v1101_v28, %v1098_v27  ;;  %v1161_v44 = vshrl.u32 %v371_v16, 5  ;;  %v1163_v48 = vshll.u32 %v367_v46, 8  ;;  %v1166_v15 = vadd.s32 %v1127_v5, %v1132_v8 }
  0xaa   :  { %v322_v29 = vsub.s32 0, %v320_v10  ;;  %v111_v30 = vadd.s32 536870912, %v110_v26  ;;  %v376_v52 = vshll.u32 %v1003_v43, %v373_v25  ;;  %v931_v54 = vadd.s32 4294967169, %v157_v31 }
  0xab   :  { %v1172_v38 = vsel %vm1150_vm14, 0, %v343_v34  ;;  %v379_v27 = vshll.u32 %v1004_v47, %v373_v25  ;;  %v386_v28 = vshrl.u32 %v1007_v53, %v374_v33  ;;  %v377_v45 = vshrl.u32 %v1004_v47, %v374_v33 }
  0xac   :  { %v936_v32 = vmin.u32 %v322_v29, %v320_v10  ;;  %v1156_v35 = vshrl.u32 %v111_v30, 30  ;;  %v380_v57 = vshrl.u32 %v1005_v49, %v374_v33  ;;  %v383_v58 = vshrl.u32 %v1006_v51, %v374_v33 }
  0xad   :  { %v375_v59 = vshrl.u32 %v1003_v43, %v374_v33  ;;  %v385_v61 = vshll.u32 %v1006_v51, %v373_v25  ;;  %v389_v62 = vshrl.u32 %v1008_v60, %v374_v33  ;;  %v1185_v0 = vadd.s32 3, %v1172_v38 }
  0xae   :  { %v324_v42 = vclz %v936_v32  ;;  %v113_v50 = vshll.u32 %v1156_v35, 30  ;;  %v382_v2 = vshll.u32 %v1005_v49, %v373_v25  ;;  %v388_v6 = vshll.u32 %v1007_v53, %v373_v25 }
  0xaf   :  { %v387_v5 = vor.u32 %v386_v28, %v385_v61  ;;  %v378_v8 = vor.u32 %v377_v45, %v376_v52  ;;  %v381_v11 = vor.u32 %v380_v57, %v379_v27  ;;  %v136_v23 = vsub.s32 4, %v1156_v35 }
  0xb0   :  { %v937_v55 = vadd.s32 4294967294, %v324_v42  ;;  %v1176_v56 = vsub.s32 %v110_v26, %v113_v50  ;;  %v384_v12 = vor.u32 %v383_v58, %v382_v2  ;;  %v390_v20 = vor.u32 %v389_v62, %v388_v6 }
  0xb1   :  { %vm391_vm1 = vcmp.lt.s32.totalorder %v1161_v44, 1  ;;  %vm394_vm2 = vcmp.lt.s32.totalorder %v1161_v44, 4  ;;  %vm392_vm3 = vcmp.lt.s32.totalorder %v1161_v44, 2  ;;  %vm393_vm4 = vcmp.lt.s32.totalorder %v1161_v44, 3 }
  0xb2   :  { %vm938_vm15 = vcmp.lt.s32.totalorder %v937_v55, 0  ;;  %v116_v1 = vsub.s32 0, %v1176_v56  ;;  %v400_v39 = vsel %vm394_vm2, %v387_v5, 920167782  ;;  %v403_v29 = vsel %vm391_vm1, %v381_v11, %v384_v12 }
  0xb3   :  { %v327_v63 = vsel %vm938_vm15, 0, %v937_v55  ;;  %vm1203_vm5 = vcmp.le.f32.partialorder %v50_v17, 0.7853982  ;;  %v396_v31 = vsel %vm394_vm2, %v384_v12, 2102212464  ;;  %v401_v32 = vsel %vm393_vm4, %v384_v12, %v400_v39 }
  0xb4   :  { %v328_v3 = vsub.s32 32, %v327_v63  ;;  %v332_v4 = vsub.s32 4294967266, %v327_v63  ;;  %v928_v7 = vmin.u32 %v116_v1, %v1176_v56  ;;  %v329_v16 = vshll.u32 %v320_v10, %v327_v63 }
  0xb5   :  { %v399_v10 = vsel %vm391_vm1, %v378_v8, %v381_v11  ;;  %v404_v33 = vsel %vm394_vm2, %v390_v20, 1326507024  ;;  %v397_v45 = vsel %vm393_vm4, %v381_v11, %v396_v31  ;;  %v163_v57 = vadd.s32 1, %v931_v54 }
  0xb6   :  { %v330_v18 = vshrl.u32 %v312_v37, %v328_v3  ;;  %v333_v19 = vadd.s32 127, %v332_v4  ;;  %v118_v22 = vclz %v928_v7  ;;  %v395_v37 = vsel %vm391_vm1, %v375_v59, %v378_v8 }
  0xb7   :  { %v405_v42 = vsel %vm393_vm4, %v387_v5, %v404_v33  ;;  %v402_v17 = vsel %vm392_vm3, %v399_v10, %v401_v32  ;;  %v1231_v5 = vand.u32 3, %v1172_v38  ;;  %v137_v54 = vsel %vm52_vm0, %v136_v23, %v1156_v35 }
  0xb8   :  { %v331_v24 = vor.u32 %v330_v18, %v329_v16  ;;  %v334_v25 = vshll.u32 %v333_v19, 23  ;;  %v929_v26 = vadd.s32 4294967294, %v118_v22  ;;  %v406_v55 = vsel %vm392_vm3, %v403_v29, %v405_v42 }
  0xb9   :  { %v1221_v61 = vmul.u32.u64.low %v1163_v48, %v406_v55  ;;  %v1222_v62 = vmul.u32.u64.high %v1163_v48, %v406_v55, %v1221_v61  ;;  %v1226_v2 = vmul.u32.u64.low %v1163_v48, %v402_v17  ;;  %v1227_v3 = vmul.u32.u64.high %v1163_v48, %v402_v17, %v1226_v2 }
  0xba   :  { %v335_v46 = vor.u32 4788187, %v334_v25  ;;  %v338_v34 = vcvt.s32.f32 %v331_v24  ;;  %vm930_vm6 = vcmp.lt.s32.totalorder %v929_v26, 0  ;;  %vm164_vm7 = vcmp.gt.s32.totalorder %v163_v57, 0 }
  0xbb   :  { %v121_v52 = vsel %vm930_vm6, 0, %v929_v26  ;;  %v165_v7 = vsel %vm164_vm7, %v163_v57, 0  ;;  %v1241_v11 = vand.u32 3, %v1185_v0  ;;  %vm416_vm8 = vc.u32 %v1222_v62, %v1226_v2 }
  0xbc   :  { %v336_v50 = vand.u32 2147483647, %v335_v46  ;;  %v122_v27 = vsub.s32 32, %v121_v52  ;;  %v126_v28 = vsub.s32 4294967266, %v121_v52  ;;  %v123_v59 = vshll.u32 %v1176_v56, %v121_v52 }
  0xbd   :  { %v1245_v38 = vshrl.u32 %v165_v7, 5  ;;  %v1252_v44 = vsel %vm1203_vm5, 0, %v137_v54  ;;  %v417_v16 = vadd.s32 1, %v1227_v3  ;;  %v167_v19 = vand.u32 31, %v165_v7 }
  0xbe   :  { %v339_v58 = vmul.f32 %v338_v34, %v336_v50  ;;  %v124_v63 = vshrl.u32 %v1166_v15, %v122_v27  ;;  %v127_v1 = vadd.s32 127, %v126_v28  ;;  %v398_v15 = vsel %vm392_vm3, %v395_v37, %v397_v45 }
  0xbf   :  { %v414_v0 = vmul.u32 %v1163_v48, %v398_v15  ;;  %v418_v22 = vsel %vm416_vm8, %v417_v16, %v1227_v3  ;;  %vm185_vm9 = vcmp.lt.s32.totalorder %v1245_v38, 1  ;;  %v168_v23 = vsub.s32 32, %v167_v19 }
  0xc0   :  { %v340_v4 = vxor.u32 2147483648, %v339_v58  ;;  %v125_v56 = vor.u32 %v124_v63, %v123_v59  ;;  %v128_v6 = vshll.u32 %v127_v1, 23  ;;  %v170_v24 = vshll.u32 %v1003_v43, %v167_v19 }
  0xc1   :  { %v419_v40 = vadd.s32 %v418_v22, %v414_v0  ;;  %vm187_vm10 = vcmp.lt.s32.totalorder %v1245_v38, 3  ;;  %v173_v39 = vshll.u32 %v1004_v47, %v167_v19  ;;  %v176_v26 = vshll.u32 %v1005_v49, %v167_v19 }
  0xc2   :  { %v341_v8 = vsel %vm258_vm13, %v340_v4, %v339_v58  ;;  %v129_v12 = vor.u32 4788187, %v128_v6  ;;  %v132_v18 = vcvt.s32.f32 %v125_v56  ;;  %v179_v48 = vshll.u32 %v1006_v51, %v167_v19 }
  0xc3   :  { %v344_v35 = vsel %vm1150_vm14, %v1049_v13, %v341_v8  ;;  %vm354_vm11 = vcmp.eq.s32.totalorder %v1231_v5, 2  ;;  %v420_v10 = vadd.s32 536870912, %v419_v40  ;;  %v171_v29 = vshrl.u32 %v1004_v47, %v168_v23  ;;  %v880_v8 = vld [vmem:[%s1435_s1 + $0x10] sm:$0xff] }
  0xc4   :  { %986 = vcosq.f32 %v344_v35  ;;  %v130_v20 = vand.u32 2147483647, %v129_v12  ;;  %v174_v46 = vshrl.u32 %v1005_v49, %v168_v23  ;;  %v1267_v31 = vshll.u32 %v1007_v53, %v167_v19 }
  0xc5   :  { %988 = vsinq.f32 %v344_v35  ;;  %vm351_vm12 = vcmp.eq.s32.totalorder %v1231_v5, 0  ;;  %v177_v33 = vshrl.u32 %v1006_v51, %v168_v23  ;;  %v180_v34 = vshrl.u32 %v1007_v53, %v168_v23  ;;  %v884_v35 = vld [vmem:[%s1436_s2 + $0x10] sm:$0xff] }
  0xc6   :  { %v133_v25 = vmul.f32 %v132_v18, %v130_v20  ;;  %v1273_v37 = vshrl.u32 %v1008_v60, %v168_v23  ;;  %vm350_vm13 = vcmp.lt.s32.totalorder %v1231_v5, 2  ;;  %vm765_vm14 = vcmp.lt.s32.totalorder %v1241_v11, 2 }
  0xc7   :  { %v1277_v47 = vshrl.u32 %v420_v10, 30  ;;  %v169_v49 = vshrl.u32 %v1003_v43, %v168_v23  ;;  %v172_v42 = vor.u32 %v171_v29, %v170_v24  ;;  %v175_v50 = vor.u32 %v174_v46, %v173_v39 }
  0xc8   :  { %v134_v32 = vxor.u32 2147483648, %v133_v25  ;;  %v178_v17 = vor.u32 %v177_v33, %v176_v26  ;;  %v1282_v51 = vor.u32 %v180_v34, %v179_v48  ;;  %v184_v53 = vor.u32 %v1273_v37, %v1267_v31 }
  0xc9   :  { %v422_v55 = vshll.u32 %v1277_v47, 30  ;;  %vm188_vm15 = vcmp.lt.s32.totalorder %v1245_v38, 4  ;;  %v189_v43 = vsel %vm185_vm9, %v169_v49, %v172_v42  ;;  %v193_v28 = vsel %vm185_vm9, %v172_v42, %v175_v50 }
  0xca   :  { %v135_v52 = vsel %vm52_vm0, %v134_v32, %v133_v25  ;;  %v190_v27 = vsel %vm188_vm15, %v178_v17, 2102212464  ;;  %v194_v45 = vsel %vm188_vm15, %v1282_v51, 920167782  ;;  %vm898_vm0 = vcmask 130048  }
  0xcb   :  { %v138_v60 = vsel %vm1203_vm5, %v1052_v14, %v135_v52  ;;  %v1300_v57 = vsub.s32 %v419_v40, %v422_v55  ;;  %vm186_vm1 = vcmp.lt.s32.totalorder %v1245_v38, 2  ;;  %v191_v58 = vsel %vm187_vm10, %v175_v50, %v190_v27 }
  0xcc   :  { %990 = vcosq.f32 %v138_v60  ;;  %v555_v63 = vadd.s32 3, %v1252_v44  ;;  %v1308_v1 = vsel %vm186_vm1, %v189_v43, %v191_v58  ;;  %v195_v3 = vsel %vm187_vm10, %v178_v17, %v194_v45 }
  0xcd   :  { %992 = vsinq.f32 %v138_v60  ;;  %vm766_vm2 = vcmp.eq.s32.totalorder %v1241_v11, 0  ;;  %vm769_vm3 = vcmp.eq.s32.totalorder %v1241_v11, 2  ;;  %v425_v54 = vsub.s32 0, %v1300_v57 }
  0xce   :  { %v987_v30 = vpop.eup %986  ;;  %v1319_v15 = vsel %vm186_vm1, %v193_v28, %v195_v3  ;;  %v197_v7 = vsel %vm185_vm9, %v175_v50, %v178_v17  ;;  %v143_v18 = vand.u32 3, %v1252_v44  ;;  %vm348_vm4 = vweird.f32 %v1049_v13 }
  0xcf   :  { %v989_v59 = vpop.eup %988  ;;  %v355_v61 = vxor.u32 2147483648, %v987_v30  ;;  %v940_v0 = vmin.u32 %v425_v54, %v1300_v57  ;;  %v556_v22 = vand.u32 3, %v555_v63  ;;  %vm142_vm5 = vweird.f32 %v1052_v14 }
  0xd0   :  { %v352_v4 = vxor.u32 2147483648, %v989_v59  ;;  %v160_v25 = vand.u32 8388607, %v153_v36  ;;  %vm144_vm6 = vcmp.lt.s32.totalorder %v143_v18, 2  ;;  %vm145_vm7 = vcmp.eq.s32.totalorder %v143_v18, 0 }
  0xd1   :  { %v356_v56 = vsel %vm354_vm11, %v355_v61, %v989_v59  ;;  %v771_v6 = vsel %vm769_vm3, %v355_v61, %v989_v59  ;;  %v427_v24 = vclz %v940_v0  ;;  %vm148_vm8 = vcmp.eq.s32.totalorder %v143_v18, 2 }
  0xd2   :  { %v353_v12 = vsel %vm351_vm12, %v987_v30, %v352_v4  ;;  %v768_v16 = vsel %vm766_vm2, %v987_v30, %v352_v4  ;;  %vm558_vm9 = vcmp.eq.s32.totalorder %v556_v22, 0  ;;  %v198_v29 = vsel %vm188_vm15, %v184_v53, 1326507024  ;;  %v882_v53 = vld [vmem:[%s1436_s2] sm:$0xff] }
  0xd3   :  { %v357_v19 = vsel %vm350_vm13, %v353_v12, %v356_v56  ;;  %v772_v20 = vsel %vm765_vm14, %v768_v16, %v771_v6  ;;  %v941_v13 = vadd.s32 4294967294, %v427_v24  ;;  %v161_v32 = vor.u32 8388608, %v160_v25 }
  0xd4   :  { %v358_v40 = vsel %vm348_vm4, nan, %v357_v19  ;;  %v773_v23 = vsel %vm348_vm4, nan, %v772_v20  ;;  %v199_v33 = vsel %vm187_vm10, %v1282_v51, %v198_v29  ;;  %vm561_vm12 = vcmp.eq.s32.totalorder %v556_v22, 2  ;;  %v878_v51 = vld [vmem:[%s1435_s1] sm:$0xff] }
  0xd5   :  { %v888_v44 = vmul.f32 %v880_v8, %v358_v40  ;;  %v892_v39 = vmul.f32 %v884_v35, %v773_v23  ;;  %v905_v26 = vmul.f32 %v880_v8, %v773_v23  ;;  %v909_v48 = vmul.f32 %v884_v35, %v358_v40 }
  0xd6   :  { %v991_v5 = vpop.eup %990  ;;  %vm942_vm11 = vcmp.lt.s32.totalorder %v941_v13, 0  ;;  %v200_v49 = vsel %vm186_vm1, %v197_v7, %v199_v33  ;;  %v415_v52 = vadd.s32 %v1226_v2, %v1222_v62  ;;  %vm557_vm10 = vcmp.lt.s32.totalorder %v556_v22, 2 }
  0xd7   :  { %v896_v11 = vsub.f32 %v888_v44, %v892_v39  ;;  %v913_v10 = vadd.f32 %v909_v48, %v905_v26  ;;  %v993_v46 = vpop.eup %992  ;;  %v149_v31 = vxor.u32 2147483648, %v991_v5  ;;  %v430_v37 = vsel %vm942_vm11, 0, %v941_v13 }
  0xd8   :  { %v146_v34 = vxor.u32 2147483648, %v993_v46  ;;  %v431_v17 = vsub.s32 32, %v430_v37  ;;  %v435_v55 = vsub.s32 4294967266, %v430_v37  ;;  %v201_v62 = vshll.u32 %v161_v32, 8 }
  0xd9   :  { %901 = vst.msk [vmem:[%s1437_s3 + $0x10] sm:$0xff] %vm898_vm0, %v896_v11  ;;  %917 = vst.msk [vmem:[%s1438_s4 + $0x10] sm:$0xff] %vm898_vm0, %v913_v10  ;;  %v150_v42 = vsel %vm148_vm8, %v149_v31, %v993_v46  ;;  %v563_v50 = vsel %vm561_vm12, %v149_v31, %v993_v46  ;;  %v432_v30 = vshll.u32 %v1300_v57, %v430_v37  ;;  %v445_v19 = vsub.s32 4, %v1277_v47 }
  0xda   :  { %v147_v60 = vsel %vm145_vm7, %v991_v5, %v146_v34  ;;  %v560_v38 = vsel %vm558_vm9, %v991_v5, %v146_v34  ;;  %v433_v28 = vshrl.u32 %v415_v52, %v431_v17  ;;  %v436_v58 = vadd.s32 127, %v435_v55 }
  0xdb   :  { %v151_v43 = vsel %vm144_vm6, %v147_v60, %v150_v42  ;;  %v564_v27 = vsel %vm557_vm10, %v560_v38, %v563_v50  ;;  %v1373_v56 = vmul.u32.u64.low %v201_v62, %v200_v49  ;;  %v1374_v6 = vmul.u32.u64.high %v201_v62, %v200_v49, %v1373_v56  ;;  %v881_v42 = vld [vmem:[%s1435_s1 + $0x18] sm:$0xff] }
  0xdc   :  { %v152_v2 = vsel %vm142_vm5, nan, %v151_v43  ;;  %v565_v45 = vsel %vm142_vm5, nan, %v564_v27  ;;  %v434_v4 = vor.u32 %v433_v28, %v432_v30  ;;  %v437_v54 = vshll.u32 %v436_v58, 23  ;;  %v885_v50 = vld [vmem:[%s1436_s2 + $0x18] sm:$0xff] }
  0xdd   :  { %v886_v59 = vmul.f32 %v878_v51, %v152_v2  ;;  %v890_v61 = vmul.f32 %v882_v53, %v565_v45  ;;  %v903_v63 = vmul.f32 %v878_v51, %v565_v45  ;;  %v907_v3 = vmul.f32 %v882_v53, %v152_v2 }
  0xde   :  { %v1377_v35 = vmul.u32.u64.low %v201_v62, %v1319_v15  ;;  %v1378_v12 = vmul.u32.u64.high %v201_v62, %v1319_v15, %v1377_v35  ;;  %v438_v14 = vor.u32 4788187, %v437_v54  ;;  %v441_v16 = vcvt.s32.f32 %v434_v4 }
  0xdf   :  { %v894_v7 = vsub.f32 %v886_v59, %v890_v61  ;;  %v911_v8 = vadd.f32 %v907_v3, %v903_v63  ;;  %v208_v20 = vmul.u32 %v201_v62, %v1308_v1  ;;  %vm361_vm14 = vcmp.lt.s32.totalorder %v1059_v21, 0 }
  0xe0   :  { %v439_v57 = vand.u32 2147483647, %v438_v14  ;;  %v209_v18 = vadd.s32 %v1377_v35, %v1374_v6  ;;  %vm210_vm13 = vc.u32 %v1374_v6, %v1377_v35  ;;  %v211_v15 = vadd.s32 1, %v1378_v12 }
  0xe1   :  { %899 = vst.msk [vmem:[%s1437_s3] sm:$0xff] %vm898_vm0, %v894_v7  ;;  %915 = vst.msk [vmem:[%s1438_s4] sm:$0xff] %vm898_vm0, %v911_v8  ;;  %vm360_vm15 = vcmp.le.f32.partialorder %v359_v41, 0.7853982  ;;  %v446_v25 = vsel %vm361_vm14, %v445_v19, %v1277_v47  ;;  %vm451_vm8 = vweird.f32 %v1059_v21  ;;  %vm155_vm9 = vcmp.lt.s32.totalorder %v1135_v9, 0 }
  0xe2   :  { %v442_v0 = vmul.f32 %v441_v16, %v439_v57  ;;  %v212_v22 = vsel %vm210_vm13, %v211_v15, %v1378_v12  ;;  %v448_v48 = vsel %vm360_vm15, 0, %v446_v25  ;;  %vm154_vm11 = vcmp.le.f32.partialorder %v153_v36, 0.7853982 }
  0xe3   :  { %v213_v23 = vadd.s32 %v212_v22, %v208_v20  ;;  %v867_v13 = vadd.s32 3, %v448_v48  ;;  %v452_v10 = vand.u32 3, %v448_v48 }
  0xe4   :  { %v443_v40 = vxor.u32 2147483648, %v442_v0 }
  0xe5   :  { %v214_v44 = vadd.s32 536870912, %v213_v23  ;;  %v868_v29 = vand.u32 3, %v867_v13  ;;  %vm453_vm1 = vcmp.lt.s32.totalorder %v452_v10, 2  ;;  %vm457_vm2 = vcmp.eq.s32.totalorder %v452_v10, 2 }
  0xe6   :  { %v444_v24 = vsel %vm361_vm14, %v443_v40, %v442_v0  ;;  %vm454_vm4 = vcmp.eq.s32.totalorder %v452_v10, 0 }
  0xe7   :  { %v447_v39 = vsel %vm360_vm15, %v1059_v21, %v444_v24  ;;  %v215_v26 = vshrl.u32 %v214_v44, 30  ;;  %vm873_vm3 = vcmp.eq.s32.totalorder %v868_v29, 2  ;;  %vm870_vm5 = vcmp.eq.s32.totalorder %v868_v29, 0  ;;  %v883_v24 = vld [vmem:[%s1436_s2 + $0x8] sm:$0xff] }
  0xe8   :  { %994 = vcosq.f32 %v447_v39  ;;  %vm869_vm6 = vcmp.lt.s32.totalorder %v868_v29, 2 }
  0xe9   :  { %996 = vsinq.f32 %v447_v39  ;;  %v216_v1 = vshll.u32 %v215_v26, 30  ;;  %v239_v7 = vsub.s32 4, %v215_v26 }
  0xeb   :  { %v217_v5 = vsub.s32 %v213_v23, %v216_v1  ;;  %v240_v12 = vsel %vm155_vm9, %v239_v7, %v215_v26  ;;  %v879_v23 = vld [vmem:[%s1435_s1 + $0x8] sm:$0xff] }
  0xec   :  { %v242_v57 = vsel %vm154_vm11, 0, %v240_v12 }
  0xed   :  { %v219_v11 = vsub.s32 0, %v217_v5  ;;  %v659_v16 = vadd.s32 3, %v242_v57 }
  0xef   :  { %v932_v46 = vmin.u32 %v219_v11, %v217_v5  ;;  %v660_v15 = vand.u32 3, %v659_v16 }
  0xf1   :  { %v221_v32 = vclz %v932_v46  ;;  %vm665_vm10 = vcmp.eq.s32.totalorder %v660_v15, 2  ;;  %vm662_vm14 = vcmp.eq.s32.totalorder %v660_v15, 0 }
  0xf2   :  { %v995_v31 = vpop.eup %994 }
  0xf3   :  { %v997_v41 = vpop.eup %996  ;;  %v458_v33 = vxor.u32 2147483648, %v995_v31  ;;  %v933_v34 = vadd.s32 4294967294, %v221_v32 }
  0xf4   :  { %v455_v47 = vxor.u32 2147483648, %v997_v41 }
  0xf5   :  { %v459_v37 = vsel %vm457_vm2, %v458_v33, %v997_v41  ;;  %v875_v49 = vsel %vm873_vm3, %v458_v33, %v997_v41  ;;  %vm934_vm7 = vcmp.lt.s32.totalorder %v933_v34, 0  ;;  %vm245_vm2 = vweird.f32 %v1135_v9 }
  0xf6   :  { %v456_v52 = vsel %vm454_vm4, %v995_v31, %v455_v47  ;;  %v872_v17 = vsel %vm870_vm5, %v995_v31, %v455_v47  ;;  %v224_v60 = vsel %vm934_vm7, 0, %v933_v34 }
  0xf7   :  { %v460_v51 = vsel %vm453_vm1, %v456_v52, %v459_v37  ;;  %v876_v53 = vsel %vm869_vm6, %v872_v17, %v875_v49  ;;  %v225_v43 = vsub.s32 32, %v224_v60  ;;  %v226_v45 = vshll.u32 %v217_v5, %v224_v60 }
  0xf8   :  { %v461_v38 = vsel %vm451_vm8, nan, %v460_v51  ;;  %v877_v55 = vsel %vm451_vm8, nan, %v876_v53  ;;  %v229_v58 = vsub.s32 4294967266, %v224_v60  ;;  %vm661_vm1 = vcmp.lt.s32.totalorder %v660_v15, 2 }
  0xf9   :  { %v889_v27 = vmul.f32 %v881_v42, %v461_v38  ;;  %v893_v28 = vmul.f32 %v885_v50, %v877_v55  ;;  %v906_v62 = vmul.f32 %v881_v42, %v877_v55  ;;  %v910_v2 = vmul.f32 %v885_v50, %v461_v38 }
  0xfa   :  { %v227_v30 = vshrl.u32 %v209_v18, %v225_v43  ;;  %v230_v3 = vadd.s32 127, %v229_v58  ;;  %v246_v18 = vand.u32 3, %v242_v57 }
  0xfb   :  { %v897_v59 = vsub.f32 %v889_v27, %v893_v28  ;;  %v914_v61 = vadd.f32 %v910_v2, %v906_v62 }
  0xfc   :  { %v228_v63 = vor.u32 %v227_v30, %v226_v45  ;;  %v231_v21 = vshll.u32 %v230_v3, 23  ;;  %vm251_vm12 = vcmp.eq.s32.totalorder %v246_v18, 2  ;;  %vm248_vm13 = vcmp.eq.s32.totalorder %v246_v18, 0 }
  0xfd   :  { %902 = vst.msk [vmem:[%s1437_s3 + $0x18] sm:$0xff] %vm898_vm0, %v897_v59  ;;  %918 = vst.msk [vmem:[%s1438_s4 + $0x18] sm:$0xff] %vm898_vm0, %v914_v61  ;;  %vm247_vm15 = vcmp.lt.s32.totalorder %v246_v18, 2 }
  0xfe   :  { %v232_v4 = vor.u32 4788187, %v231_v21  ;;  %v235_v56 = vcvt.s32.f32 %v228_v63 }
 0x100   :  { %v233_v54 = vand.u32 2147483647, %v232_v4 }
 0x102   :  { %v236_v6 = vmul.f32 %v235_v56, %v233_v54 }
 0x104   :  { %v237_v8 = vxor.u32 2147483648, %v236_v6 }
 0x106   :  { %v238_v35 = vsel %vm155_vm9, %v237_v8, %v236_v6 }
 0x107   :  { %v241_v14 = vsel %vm154_vm11, %v1135_v9, %v238_v35 }
 0x108   :  { %998 = vcosq.f32 %v241_v14 }
 0x109   :  { %1000 = vsinq.f32 %v241_v14 }
 0x112   :  { %v999_v0 = vpop.eup %998 }
 0x113   :  { %v1001_v19 = vpop.eup %1000  ;;  %v252_v20 = vxor.u32 2147483648, %v999_v0 }
 0x114   :  { %v249_v22 = vxor.u32 2147483648, %v1001_v19 }
 0x115   :  { %v253_v40 = vsel %vm251_vm12, %v252_v20, %v1001_v19  ;;  %v667_v36 = vsel %vm665_vm10, %v252_v20, %v1001_v19 }
 0x116   :  { %v250_v25 = vsel %vm248_vm13, %v999_v0, %v249_v22  ;;  %v664_v44 = vsel %vm662_vm14, %v999_v0, %v249_v22 }
 0x117   :  { %v254_v39 = vsel %vm247_vm15, %v250_v25, %v253_v40  ;;  %v668_v26 = vsel %vm661_vm1, %v664_v44, %v667_v36 }
 0x118   :  { %v255_v48 = vsel %vm245_vm2, nan, %v254_v39  ;;  %v669_v1 = vsel %vm245_vm2, nan, %v668_v26 }
 0x119   :  { %v887_v13 = vmul.f32 %v879_v23, %v255_v48  ;;  %v891_v5 = vmul.f32 %v883_v24, %v669_v1  ;;  %v904_v11 = vmul.f32 %v879_v23, %v669_v1  ;;  %v908_v10 = vmul.f32 %v883_v24, %v255_v48 }
 0x11b   :  { %v895_v29 = vsub.f32 %v887_v13, %v891_v5  ;;  %v912_v46 = vadd.f32 %v908_v10, %v904_v11 }
 0x11d   :  { %900 = vst.msk [vmem:[%s1437_s3 + $0x8] sm:$0xff] %vm898_vm0, %v895_v29  ;;  %916 = vst.msk [vmem:[%s1438_s4 + $0x8] sm:$0xff] %vm898_vm0, %v912_v46 }

</bundles_post_ra>
